<compile_context>
chip_gen: v5e
topology: v5e:2x2
jax: 0.10.0
libtpu: 0.0.40
codegen_flags: <defaults>
</compile_context>

<pallas_src>
import functools

import jax
import jax.numpy as jnp
from jax.experimental import pallas as pl
from jax.experimental.pallas import tpu as pltpu


def _round_up(n, m):
    return ((n + m - 1) // m) * m


def _mlp_kernel(x_ref, w1_ref, b1_ref, w2_ref, b2_ref, w3_ref, b3_ref, o_ref):
    # Cast the streamed activation tile to bf16 in-kernel (x is DMA'd as f32; the cast is
    # hidden under the tile's compute instead of costing an extra XLA pass over x in HBM).
    x_bf = x_ref[...].astype(jnp.bfloat16)

    # Layer 1: Linear(F -> H) on the MXU (bf16 operands, f32 accumulate); bias + ReLU on VPU.
    h1 = jnp.dot(x_bf, w1_ref[...], preferred_element_type=jnp.float32)
    h1 = jnp.maximum(h1 + b1_ref[...], 0.0)          # Dropout(0.2) = identity (eval mode)

    # Layer 2: Linear(H -> H), same recipe (bf16 MXU operands, f32 accumulate/epilogue).
    h2 = jnp.dot(h1.astype(jnp.bfloat16), w2_ref[...],
                 preferred_element_type=jnp.float32)
    h2 = jnp.maximum(h2 + b2_ref[...], 0.0)          # Dropout(0.2) = identity (eval mode)

    # Layer 3: Linear(H -> 1) + Sigmoid with a lane-dense epilogue.
    # Leading-dim split (tile_b, H) -> (rows, 128, H) is a free re-tiling (last dim kept);
    # the H-reduction goes to the XLU; +b3, sigmoid (EUP) and the store all run on dense
    # (rows, 128) vregs and hit unmasked full-lane stores.
    tile_b, h = h2.shape
    rows = tile_b // 128
    h2r = h2.reshape(rows, 128, h)
    logits = jnp.sum(h2r * w3_ref[...], axis=-1) + b3_ref[0, 0]   # (rows, 128)
    o_ref[...] = jax.nn.sigmoid(logits).astype(o_ref.dtype)


@functools.partial(jax.jit, static_argnames=("tile_b",))
def diet_recommender_forward(x, w1, b1, w2, b2, w3, b3, *, tile_b=8192):
    """Fused forward pass.

    x:  (B, F) float32
    w1: (F, H), b1: (1, H)   -- weights stored as (in, out), transposed vs. PyTorch
    w2: (H, H), b2: (1, H)
    w3: (1, H), b3: (1, 1)   -- final layer kept as a row (out_features = 1)
    returns: (B, 1) float32 in [0, 1]

    Note: MXU operands run in bf16 with f32 accumulation (intentional inference contract);
    tolerance vs. a pure-f32 reference is a few e-2.
    """
    B, F = x.shape
    H = w1.shape[1]

    # Lane-dense output blocks need row-tiles that are multiples of 128.  When several tiles
    # are needed, keep tile_b a multiple of 1024 so the output block's sublane count
    # (tile_b // 128) stays a multiple of 8.
    if B <= tile_b:
        tile_b = _round_up(B, 128)         # single tile covering the whole (padded) batch
        n_tiles = 1
    else:
        tile_b = _round_up(tile_b, 1024)
        n_tiles = pl.cdiv(B, tile_b)
    b_pad = n_tiles * tile_b
    if b_pad != B:
        # Zero rows flow through the MLP and are sliced off below; only paid when B is not a
        # tile multiple.
        x = jnp.pad(x, ((0, b_pad - B), (0, 0)))

    # Tiny weights cast in the wrapper; activations cast in-kernel.
    w1_bf = w1.astype(jnp.bfloat16)
    w2_bf = w2.astype(jnp.bfloat16)

    out_rows = tile_b // 128

    out = pl.pallas_call(
        _mlp_kernel,
        out_shape=jax.ShapeDtypeStruct((b_pad // 128, 128), jnp.float32),
        grid_spec=pltpu.PrefetchScalarGridSpec(
            num_scalar_prefetch=0,
            grid=(n_tiles,),
            in_specs=[
                pl.BlockSpec((tile_b, F), lambda i: (i, 0)),        # x: streamed f32, dbl-buffered
                pl.BlockSpec((F, H), lambda i: (0, 0)),             # w1: VMEM-resident
                pl.BlockSpec((1, H), lambda i: (0, 0)),             # b1: resident
                pl.BlockSpec((H, H), lambda i: (0, 0)),             # w2: resident
                pl.BlockSpec((1, H), lambda i: (0, 0)),             # b2: resident
                pl.BlockSpec((1, H), lambda i: (0, 0)),             # w3 row: resident
                pl.BlockSpec(memory_space=pltpu.MemorySpace.SMEM),  # b3: scalar in SMEM
            ],
            out_specs=pl.BlockSpec((out_rows, 128), lambda i: (i, 0)),  # lane-dense output
        ),
        compiler_params=pltpu.CompilerParams(
            dimension_semantics=("parallel",),        # shard batch tiles across both v7x TCs
            vmem_limit_bytes=48 * 1024 * 1024,        # ~24 MiB used @ tile_b=8192; v7x-safe
        ),
    )(x, w1_bf, b1, w2_bf, b2, w3, b3)

    return out.reshape(b_pad, 1)[:B]


def _reference_forward(x, w1, b1, w2, b2, w3, b3):
    h1 = jnp.maximum(x @ w1 + b1, 0.0)
    h2 = jnp.maximum(h1 @ w2 + b2, 0.0)
    logits = jnp.sum(h2 * w3, axis=-1, keepdims=True) + b3
    return jax.nn.sigmoid(logits)


def init_params(key, num_features, hidden_size):
    """PyTorch nn.Linear default init (U[-1/sqrt(fan_in), +1/sqrt(fan_in)]).
    Weights stored as (in, out); biases as (1, out); final layer weight as a (1, H) row."""
    k = jax.random.split(key, 6)

    def lin(kw, kb, fan_in, fan_out):
        bound = 1.0 / jnp.sqrt(jnp.float32(fan_in))
        w = jax.random.uniform(kw, (fan_in, fan_out), jnp.float32, -bound, bound)
        b = jax.random.uniform(kb, (1, fan_out), jnp.float32, -bound, bound)
        return w, b

    w1, b1 = lin(k[0], k[1], num_features, hidden_size)
    w2, b2 = lin(k[2], k[3], hidden_size, hidden_size)
    w3t, b3 = lin(k[4], k[5], hidden_size, 1)   # (H, 1)
    w3 = w3t.T                                   # keep as (1, H) row for the lane reduction
    return w1, b1, w2, b2, w3, b3


if __name__ == "__main__":
    NUM_FEATURES = 32
    HIDDEN = 64
    BATCH = 8

    key = jax.random.PRNGKey(0)
    k_params, k_x = jax.random.split(key)

    params = init_params(k_params, NUM_FEATURES, HIDDEN)
    x = jax.random.normal(k_x, (BATCH, NUM_FEATURES), jnp.float32)

    out = diet_recommender_forward(x, *params)
    out = jax.block_until_ready(out)

    assert out.shape == (BATCH, 1)
    assert bool(jnp.all((out >= 0.0) & (out <= 1.0)))

    # Loose check vs. an f32 XLA reference (kernel uses bf16 MXU operands).
    ref = _reference_forward(x, *params)
    assert bool(jnp.max(jnp.abs(out - ref)) < 3e-2), "mismatch vs reference"

    print("KERNEL_OK")
</pallas_src>

<mosaic_0001>
module attributes {stable_mosaic.version = 11 : i64} {
  func.func @_mlp_kernel(%arg0: i32, %arg1: memref<128x32xf32, #tpu.memory_space<vmem>>, %arg2: memref<32x64xbf16, #tpu.memory_space<vmem>>, %arg3: memref<1x64xf32, #tpu.memory_space<vmem>>, %arg4: memref<64x64xbf16, #tpu.memory_space<vmem>>, %arg5: memref<1x64xf32, #tpu.memory_space<vmem>>, %arg6: memref<1x64xf32, #tpu.memory_space<vmem>>, %arg7: memref<1x1xf32, #tpu.memory_space<smem>>, %arg8: memref<1x128xf32, #tpu.memory_space<vmem>>) attributes {dimension_semantics = [#tpu.dimension_semantics<parallel>], iteration_bounds = array<i64: 1>, scalar_prefetch = 0 : i64, scratch_operands = 0 : i64, tpu.core_type = #tpu.core_type<tc>, window_params = [{transform_indices = @transform_0, window_bounds = array<i64: 128, 32>}, {pipeline_mode = #tpu.pipeline_mode<synchronous>, transform_indices = @transform_1, window_bounds = array<i64: 32, 64>}, {pipeline_mode = #tpu.pipeline_mode<synchronous>, transform_indices = @transform_2, window_bounds = array<i64: 1, 64>}, {pipeline_mode = #tpu.pipeline_mode<synchronous>, transform_indices = @transform_3, window_bounds = array<i64: 64, 64>}, {pipeline_mode = #tpu.pipeline_mode<synchronous>, transform_indices = @transform_4, window_bounds = array<i64: 1, 64>}, {pipeline_mode = #tpu.pipeline_mode<synchronous>, transform_indices = @transform_5, window_bounds = array<i64: 1, 64>}, {transform_indices = @transform_6, window_bounds = array<i64: 1, 1>}, {transform_indices = @transform_7, window_bounds = array<i64: 1, 128>}]} {
    %c0 = arith.constant 0 : index
    %c0_0 = arith.constant 0 : index
    %0 = vector.load %arg1[%c0, %c0_0] : memref<128x32xf32, #tpu.memory_space<vmem>>, vector<128x32xf32>
    %1 = arith.truncf %0 : vector<128x32xf32> to vector<128x32xbf16>
    %c0_1 = arith.constant 0 : index
    %c0_2 = arith.constant 0 : index
    %2 = vector.load %arg2[%c0_1, %c0_2] : memref<32x64xbf16, #tpu.memory_space<vmem>>, vector<32x64xbf16>
    %cst = arith.constant dense<0.000000e+00> : vector<128x64xf32>
    %3 = tpu.matmul %1, %2, %cst {dimension_numbers = #tpu.dot_dimension_numbers<[1], [0], [0], [1], [0, 0, 1, 1], [], []>} : vector<128x32xbf16>, vector<32x64xbf16>, vector<128x64xf32> -> vector<128x64xf32>
    %c0_3 = arith.constant 0 : index
    %c0_4 = arith.constant 0 : index
    %4 = vector.load %arg3[%c0_3, %c0_4] : memref<1x64xf32, #tpu.memory_space<vmem>>, vector<1x64xf32>
    %5 = vector.broadcast %4 : vector<1x64xf32> to vector<128x64xf32>
    %6 = arith.addf %3, %5 : vector<128x64xf32>
    %cst_5 = arith.constant 0.000000e+00 : f32
    %7 = vector.broadcast %cst_5 : f32 to vector<128x64xf32>
    %8 = arith.maximumf %6, %7 : vector<128x64xf32>
    %9 = arith.truncf %8 : vector<128x64xf32> to vector<128x64xbf16>
    %c0_6 = arith.constant 0 : index
    %c0_7 = arith.constant 0 : index
    %10 = vector.load %arg4[%c0_6, %c0_7] : memref<64x64xbf16, #tpu.memory_space<vmem>>, vector<64x64xbf16>
    %cst_8 = arith.constant dense<0.000000e+00> : vector<128x64xf32>
    %11 = tpu.matmul %9, %10, %cst_8 {dimension_numbers = #tpu.dot_dimension_numbers<[1], [0], [0], [1], [0, 0, 1, 1], [], []>} : vector<128x64xbf16>, vector<64x64xbf16>, vector<128x64xf32> -> vector<128x64xf32>
    %c0_9 = arith.constant 0 : index
    %c0_10 = arith.constant 0 : index
    %12 = vector.load %arg5[%c0_9, %c0_10] : memref<1x64xf32, #tpu.memory_space<vmem>>, vector<1x64xf32>
    %13 = vector.broadcast %12 : vector<1x64xf32> to vector<128x64xf32>
    %14 = arith.addf %11, %13 : vector<128x64xf32>
    %cst_11 = arith.constant 0.000000e+00 : f32
    %15 = vector.broadcast %cst_11 : f32 to vector<128x64xf32>
    %16 = arith.maximumf %14, %15 : vector<128x64xf32>
    %17 = vector.shape_cast %16 : vector<128x64xf32> to vector<1x128x64xf32>
    %c0_12 = arith.constant 0 : index
    %c0_13 = arith.constant 0 : index
    %18 = vector.load %arg6[%c0_12, %c0_13] : memref<1x64xf32, #tpu.memory_space<vmem>>, vector<1x64xf32>
    %19 = vector.shape_cast %18 : vector<1x64xf32> to vector<1x1x64xf32>
    %20 = vector.broadcast %19 : vector<1x1x64xf32> to vector<1x128x64xf32>
    %21 = arith.mulf %17, %20 : vector<1x128x64xf32>
    %cst_14 = arith.constant dense<0.000000e+00> : vector<1x128xf32>
    %22 = vector.multi_reduction <add>, %21, %cst_14 [2] : vector<1x128x64xf32> to vector<1x128xf32>
    %c0_15 = arith.constant 0 : index
    %c0_16 = arith.constant 0 : index
    %23 = memref.load %arg7[%c0_15, %c0_16] : memref<1x1xf32, #tpu.memory_space<smem>>
    %24 = vector.broadcast %23 : f32 to vector<1x128xf32>
    %25 = arith.addf %22, %24 : vector<1x128xf32>
    %26 = arith.negf %25 : vector<1x128xf32>
    %27 = math.exp %26 : vector<1x128xf32>
    %cst_17 = arith.constant 1.000000e+00 : f32
    %28 = vector.broadcast %cst_17 : f32 to vector<1x128xf32>
    %29 = arith.addf %28, %27 : vector<1x128xf32>
    %30 = arith.divf %28, %29 : vector<1x128xf32>
    %c0_18 = arith.constant 0 : index
    %c0_19 = arith.constant 0 : index
    %31 = vector.load %arg8[%c0_18, %c0_19] : memref<1x128xf32, #tpu.memory_space<vmem>>, vector<1x128xf32>
    tpu.vector_store %arg8[%c0_18, %c0_19], %30 {strides = array<i32>} : memref<1x128xf32, #tpu.memory_space<vmem>>, vector<1x128xf32>,
    return
  }
  func.func @transform_0(%arg0: i32) -> (i32, i32) {
    %c0_i32 = arith.constant 0 : i32
    %c0_i32_0 = arith.constant 0 : i32
    return %arg0, %c0_i32 : i32, i32
  }
  func.func @transform_1(%arg0: i32) -> (i32, i32) {
    %c0_i32 = arith.constant 0 : i32
    %c0_i32_0 = arith.constant 0 : i32
    %c0_i32_1 = arith.constant 0 : i32
    return %c0_i32, %c0_i32_0 : i32, i32
  }
  func.func @transform_2(%arg0: i32) -> (i32, i32) {
    %c0_i32 = arith.constant 0 : i32
    %c0_i32_0 = arith.constant 0 : i32
    %c0_i32_1 = arith.constant 0 : i32
    return %c0_i32, %c0_i32_0 : i32, i32
  }
  func.func @transform_3(%arg0: i32) -> (i32, i32) {
    %c0_i32 = arith.constant 0 : i32
    %c0_i32_0 = arith.constant 0 : i32
    %c0_i32_1 = arith.constant 0 : i32
    return %c0_i32, %c0_i32_0 : i32, i32
  }
  func.func @transform_4(%arg0: i32) -> (i32, i32) {
    %c0_i32 = arith.constant 0 : i32
    %c0_i32_0 = arith.constant 0 : i32
    %c0_i32_1 = arith.constant 0 : i32
    return %c0_i32, %c0_i32_0 : i32, i32
  }
  func.func @transform_5(%arg0: i32) -> (i32, i32) {
    %c0_i32 = arith.constant 0 : i32
    %c0_i32_0 = arith.constant 0 : i32
    %c0_i32_1 = arith.constant 0 : i32
    return %c0_i32, %c0_i32_0 : i32, i32
  }
  func.func @transform_6(%arg0: i32) -> (i32, i32) {
    %c0_i32 = arith.constant 0 : i32
    %c0_i32_0 = arith.constant 0 : i32
    %c0_i32_1 = arith.constant 0 : i32
    return %c0_i32, %c0_i32_0 : i32, i32
  }
  func.func @transform_7(%arg0: i32) -> (i32, i32) {
    %c0_i32 = arith.constant 0 : i32
    %c0_i32_0 = arith.constant 0 : i32
    return %arg0, %c0_i32 : i32, i32
  }
}

</mosaic_0001>

<bundles_post_ra>
// kernel: diet_recommender_forward.1
= control target key start
LH: loop header
LB: loop body
LE: loop exit
PB: predicated region body
PF: predicated region fallthrough
CT: control target
= control target key end

     0   :  { %vm72_vm0 = vcmask 261120   ;;  %vm206_vm1 = vcmask 523264   ;;  %vm707_vm10 = vcmask 130112   ;;  %s1557_s1 = inlined_call_operand.vmem [shape: bf16[32,64], index: 1, kind: input, shape index: {}]   ;;  %s1558_s0 = inlined_call_operand.vmem [shape: f32[128,32], index: 0, kind: input, shape index: {}]   ;;  %s1559_s2 = inlined_call_operand.vmem [shape: f32[1,64], index: 2, kind: input, shape index: {}]   ;;  %s1560_s3 = inlined_call_operand.vmem [shape: bf16[64,64], index: 3, kind: input, shape index: {}]   ;;  %s1561_s4 = inlined_call_operand.vmem [shape: f32[1,64], index: 4, kind: input, shape index: {}]   ;;  %s1562_s5 = inlined_call_operand.vmem [shape: f32[1,64], index: 5, kind: input, shape index: {}]   ;;  %s1563_s6 = inlined_call_operand.<no memory space> [shape: f32[1,1], index: 6, kind: input, shape index: {}]   ;;  %s1564_s7 = inlined_call_operand.vmem [shape: f32[1,128], index: 7, kind: output, shape index: {}]  }
   0x1   :  { %v828_v0 = vld [vmem:[%s1557_s1 + $0x8] sm:$0xff]  ;;  %v827_v1 = vld [vmem:[%s1557_s1] sm:$0xff]  ;;  %v30_v5 = vld [vmem:[%s1558_s0 + $0x10] sm:$0xff] }
   0x2   :  { %103 = vmatpush.bf16.msra.mxu0 %v828_v0  ;;  %v28_v2 = vld [vmem:[%s1558_s0] sm:$0xff]  ;;  %v29_v3 = vld [vmem:[%s1558_s0 + $0x8] sm:$0xff]  ;;  %833 = vmatpush.bf16.msra.mxu3 %v828_v0  ;;  %v31_v6 = vld [vmem:[%s1558_s0 + $0x18] sm:$0xff] }
   0x3   :  { %v44_v4 = vpack.c.bf16 %v29_v3, %v28_v2  ;;  %v45_v7 = vpack.c.bf16 %v31_v6, %v30_v5  ;;  %v32_v8 = vld [vmem:[%s1558_s0 + $0x20] sm:$0xff]  ;;  %v33_v9 = vld [vmem:[%s1558_s0 + $0x28] sm:$0xff]  ;;  %v38_v11 = vld [vmem:[%s1558_s0 + $0x50] sm:$0xff] }
   0x4   :  { %v46_v10 = vpack.c.bf16 %v33_v9, %v32_v8  ;;  %v39_v12 = vld [vmem:[%s1558_s0 + $0x58] sm:$0xff]  ;;  %v34_v14 = vld [vmem:[%s1558_s0 + $0x30] sm:$0xff]  ;;  %v40_v16 = vld [vmem:[%s1558_s0 + $0x60] sm:$0xff] }
   0x5   :  { %v49_v13 = vpack.c.bf16 %v39_v12, %v38_v11  ;;  %v35_v15 = vld [vmem:[%s1558_s0 + $0x38] sm:$0xff]  ;;  %v41_v17 = vld [vmem:[%s1558_s0 + $0x68] sm:$0xff]  ;;  %v36_v20 = vld [vmem:[%s1558_s0 + $0x40] sm:$0xff] }
   0x6   :  { %104 = vmatpush.bf16.msra.mxu0 %v827_v1  ;;  %834 = vmatpush.bf16.msra.mxu3 %v827_v1  ;;  %v47_v18 = vpack.c.bf16 %v35_v15, %v34_v14  ;;  %v50_v19 = vpack.c.bf16 %v41_v17, %v40_v16  ;;  %v37_v21 = vld [vmem:[%s1558_s0 + $0x48] sm:$0xff]  ;;  %v42_v22 = vld [vmem:[%s1558_s0 + $0x70] sm:$0xff]  ;;  %v43_v23 = vld [vmem:[%s1558_s0 + $0x78] sm:$0xff] }
   0x7   :  { %v48_v24 = vpack.c.bf16 %v37_v21, %v36_v20  ;;  %v51_v25 = vpack.c.bf16 %v43_v23, %v42_v22  ;;  %v832_v26 = vld [vmem:[%s1560_s3 + $0x18] sm:$0xff]  ;;  %v831_v27 = vld [vmem:[%s1560_s3 + $0x10] sm:$0xff]  ;;  %v830_v28 = vld [vmem:[%s1560_s3 + $0x8] sm:$0xff] }
   0x8   :  { %235 = vmatpush.bf16.msra.mxu1 %v832_v26  ;;  %835 = vmatpush.bf16.msra.mxu2 %v832_v26  ;;  %v829_v29 = vld [vmem:[%s1560_s3] sm:$0xff] }
   0x9   :  { %779 = vmatmul.msk.bf16.vlgmr.msra.gmra.mxu0 %vm72_vm0, %v44_v4  ;;  %784 = vmatmul.msk.bf16.vlgmr.msra.gmra.mxu3 %vm72_vm0, %v49_v13  ;;  %v839_v31 = vld [vmem:[%s1559_s2] ss:$0 sm:$0xff] }
   0xa   :  { %v1034_v23 = vld [vmem:[%s1561_s4] ss:$0 sm:$0xff] }
   0xb   :  { %v1040_v26 = vld [vmem:[%s1562_s5] ss:$0 sm:$0xff] }
   0xc   :  { %236 = vmatpush.bf16.msra.mxu1 %v831_v27  ;;  %836 = vmatpush.bf16.msra.mxu2 %v831_v27 }
  0x10   :  { %237 = vmatpush.bf16.msra.mxu1 %v830_v28  ;;  %837 = vmatpush.bf16.msra.mxu2 %v830_v28 }
  0x14   :  { %238 = vmatpush.bf16.msra.mxu1 %v829_v29  ;;  %838 = vmatpush.bf16.msra.mxu2 %v829_v29 }
  0x19   :  { %780 = vmatmul.msk.bf16.gmra.mxu0 %vm72_vm0, %v45_v7  ;;  %785 = vmatmul.msk.bf16.gmra.mxu3 %vm72_vm0, %v50_v19 }
  0x29   :  { %781 = vmatmul.msk.bf16.gmra.mxu0 %vm72_vm0, %v46_v10  ;;  %786 = vmatmul.msk.bf16.gmra.mxu3 %vm72_vm0, %v51_v25 }
  0x39   :  { %782 = vmatmul.msk.bf16.gmra.mxu0 %vm72_vm0, %v47_v18 }
  0x49   :  { %783 = vmatmul.msk.bf16.gmra.mxu0 %vm72_vm0, %v48_v24  ;;  %vm711_vm0 = vcmask 195712  }
  0x86   :  { %v106_v30 = vpop.f32.mrf.mxu0 }
  0x87   :  { %v107_v32 = vadd.f32 %v839_v31, %v106_v30 }
  0x89   :  { %v146_v35 = vmax.f32 %v107_v32, 0.0 }
  0x8c   :  { %v131_v60 = vpop.f32.mrf.mxu3 }
  0x8d   :  { %v132_v5 = vadd.f32 %v839_v31, %v131_v60 }
  0x8e   :  { %v108_v33 = vpop.f32.mrf.mxu0 }
  0x8f   :  { %v109_v34 = vadd.f32 %v839_v31, %v108_v33  ;;  %v156_v7 = vmax.f32 %v132_v5, 0.0 }
  0x91   :  { %v147_v36 = vmax.f32 %v109_v34, 0.0 }
  0x93   :  { %v162_v37 = vpack.c.bf16 %v147_v36, %v146_v35 }
  0x94   :  { %v133_v0 = vpop.f32.mrf.mxu3 }
  0x95   :  { %803 = vmatmul.msk.bf16.vlgmr.msra.gmra.mxu1 %vm206_vm1, %v162_v37  ;;  %v134_v6 = vadd.f32 %v839_v31, %v133_v0 }
  0x96   :  { %v111_v38 = vpop.f32.mrf.mxu0 }
  0x97   :  { %v112_v39 = vadd.f32 %v839_v31, %v111_v38  ;;  %v157_v8 = vmax.f32 %v134_v6, 0.0 }
  0x99   :  { %v148_v42 = vmax.f32 %v112_v39, 0.0  ;;  %v167_v9 = vpack.c.bf16 %v157_v8, %v156_v7 }
  0x9c   :  { %v136_v4 = vpop.f32.mrf.mxu3 }
  0x9d   :  { %v137_v11 = vadd.f32 %v839_v31, %v136_v4 }
  0x9e   :  { %v113_v40 = vpop.f32.mrf.mxu0 }
  0x9f   :  { %v114_v41 = vadd.f32 %v839_v31, %v113_v40  ;;  %v158_v14 = vmax.f32 %v137_v11, 0.0 }
  0xa1   :  { %v149_v43 = vmax.f32 %v114_v41, 0.0 }
  0xa3   :  { %v163_v44 = vpack.c.bf16 %v149_v43, %v148_v42 }
  0xa4   :  { %v138_v10 = vpop.f32.mrf.mxu3 }
  0xa5   :  { %804 = vmatmul.msk.bf16.gmra.mxu1 %vm206_vm1, %v163_v44  ;;  %v139_v12 = vadd.f32 %v839_v31, %v138_v10 }
  0xa6   :  { %v116_v45 = vpop.f32.mrf.mxu0 }
  0xa7   :  { %v117_v46 = vadd.f32 %v839_v31, %v116_v45  ;;  %v159_v15 = vmax.f32 %v139_v12, 0.0 }
  0xa9   :  { %v150_v49 = vmax.f32 %v117_v46, 0.0  ;;  %v168_v16 = vpack.c.bf16 %v159_v15, %v158_v14 }
  0xac   :  { %v141_v13 = vpop.f32.mrf.mxu3 }
  0xad   :  { %v142_v18 = vadd.f32 %v839_v31, %v141_v13 }
  0xae   :  { %v118_v47 = vpop.f32.mrf.mxu0 }
  0xaf   :  { %v119_v48 = vadd.f32 %v839_v31, %v118_v47  ;;  %v160_v20 = vmax.f32 %v142_v18, 0.0 }
  0xb1   :  { %v151_v50 = vmax.f32 %v119_v48, 0.0 }
  0xb3   :  { %v164_v51 = vpack.c.bf16 %v151_v50, %v150_v49 }
  0xb4   :  { %v143_v17 = vpop.f32.mrf.mxu3 }
  0xb5   :  { %805 = vmatmul.msk.bf16.gmra.mxu1 %vm206_vm1, %v164_v51  ;;  %v144_v19 = vadd.f32 %v839_v31, %v143_v17 }
  0xb6   :  { %v121_v52 = vpop.f32.mrf.mxu0 }
  0xb7   :  { %v122_v53 = vadd.f32 %v839_v31, %v121_v52  ;;  %v161_v21 = vmax.f32 %v144_v19, 0.0 }
  0xb9   :  { %v152_v56 = vmax.f32 %v122_v53, 0.0  ;;  %v169_v22 = vpack.c.bf16 %v161_v21, %v160_v20 }
  0xbe   :  { %v123_v54 = vpop.f32.mrf.mxu0 }
  0xbf   :  { %v124_v55 = vadd.f32 %v839_v31, %v123_v54 }
  0xc1   :  { %v153_v57 = vmax.f32 %v124_v55, 0.0 }
  0xc3   :  { %v165_v58 = vpack.c.bf16 %v153_v57, %v152_v56 }
  0xc5   :  { %806 = vmatmul.msk.bf16.gmra.mxu1 %vm206_vm1, %v165_v58 }
  0xc6   :  { %v126_v59 = vpop.f32.mrf.mxu0 }
  0xc7   :  { %v127_v61 = vadd.f32 %v839_v31, %v126_v59 }
  0xc9   :  { %v154_v1 = vmax.f32 %v127_v61, 0.0 }
  0xce   :  { %v128_v62 = vpop.f32.mrf.mxu0 }
  0xcf   :  { %v129_v63 = vadd.f32 %v839_v31, %v128_v62 }
  0xd1   :  { %v155_v2 = vmax.f32 %v129_v63, 0.0 }
  0xd3   :  { %v166_v3 = vpack.c.bf16 %v155_v2, %v154_v1 }
  0xd5   :  { %807 = vmatmul.msk.bf16.vlgmr.msra.gmra.mxu2 %vm206_vm1, %v166_v3 }
  0xe5   :  { %808 = vmatmul.msk.bf16.gmra.mxu2 %vm206_vm1, %v167_v9 }
  0xf5   :  { %809 = vmatmul.msk.bf16.gmra.mxu2 %vm206_vm1, %v168_v16 }
 0x105   :  { %810 = vmatmul.msk.bf16.gmra.mxu2 %vm206_vm1, %v169_v22 }
 0x112   :  { %v240_v24 = vpop.f32.mrf.mxu1 }
 0x113   :  { %v241_v25 = vadd.f32 %v1034_v23, %v240_v24 }
 0x115   :  { %v280_v27 = vmax.f32 %v241_v25, 0.0 }
 0x117   :  { %v300_v28 = vmul.f32 %v1040_v26, %v280_v27 }
 0x119   :  { %v316_v29 = vsel %vm206_vm1, %v300_v28, 0.0 }
 0x11a   :  { %v242_v30 = vpop.f32.mrf.mxu1  ;;  %317 = vadd.xlane.f32.xlu0 %v316_v29 }
 0x11b   :  { %v243_v31 = vadd.f32 %v1034_v23, %v242_v30 }
 0x11d   :  { %v281_v32 = vmax.f32 %v243_v31, 0.0 }
 0x11f   :  { %v301_v33 = vmul.f32 %v1040_v26, %v281_v32 }
 0x121   :  { %v319_v34 = vsel %vm206_vm1, %v301_v33, 0.0 }
 0x122   :  { %v245_v35 = vpop.f32.mrf.mxu1  ;;  %320 = vadd.xlane.f32.xlu0 %v319_v34 }
 0x123   :  { %v246_v36 = vadd.f32 %v1034_v23, %v245_v35 }
 0x125   :  { %v282_v37 = vmax.f32 %v246_v36, 0.0 }
 0x127   :  { %v302_v38 = vmul.f32 %v1040_v26, %v282_v37 }
 0x129   :  { %v322_v39 = vsel %vm206_vm1, %v302_v38, 0.0 }
 0x12a   :  { %v247_v40 = vpop.f32.mrf.mxu1  ;;  %323 = vadd.xlane.f32.xlu1 %v322_v39 }
 0x12b   :  { %v248_v41 = vadd.f32 %v1034_v23, %v247_v40 }
 0x12d   :  { %v283_v42 = vmax.f32 %v248_v41, 0.0 }
 0x12f   :  { %v303_v43 = vmul.f32 %v1040_v26, %v283_v42 }
 0x131   :  { %v325_v44 = vsel %vm206_vm1, %v303_v43, 0.0 }
 0x132   :  { %v250_v45 = vpop.f32.mrf.mxu1  ;;  %326 = vadd.xlane.f32.xlu1 %v325_v44 }
 0x133   :  { %v251_v46 = vadd.f32 %v1034_v23, %v250_v45  ;;  %v1092_v45 = vstv %s1563_s6 }
 0x135   :  { %v284_v47 = vmax.f32 %v251_v46, 0.0 }
 0x137   :  { %v304_v48 = vmul.f32 %v1040_v26, %v284_v47 }
 0x139   :  { %v328_v49 = vsel %vm206_vm1, %v304_v48, 0.0 }
 0x13a   :  { %v252_v50 = vpop.f32.mrf.mxu1  ;;  %329 = vadd.xlane.f32.xlu2 %v328_v49 }
 0x13b   :  { %v253_v51 = vadd.f32 %v1034_v23, %v252_v50 }
 0x13d   :  { %v285_v52 = vmax.f32 %v253_v51, 0.0 }
 0x13f   :  { %v305_v53 = vmul.f32 %v1040_v26, %v285_v52 }
 0x141   :  { %v331_v54 = vsel %vm206_vm1, %v305_v53, 0.0 }
 0x142   :  { %v255_v55 = vpop.f32.mrf.mxu1  ;;  %332 = vadd.xlane.f32.xlu2 %v331_v54 }
 0x143   :  { %v256_v56 = vadd.f32 %v1034_v23, %v255_v55 }
 0x145   :  { %v286_v57 = vmax.f32 %v256_v56, 0.0 }
 0x147   :  { %v306_v58 = vmul.f32 %v1040_v26, %v286_v57 }
 0x149   :  { %v334_v59 = vsel %vm206_vm1, %v306_v58, 0.0 }
 0x14a   :  { %v257_v60 = vpop.f32.mrf.mxu1  ;;  %335 = vadd.xlane.f32.xlu0 %v334_v59 }
 0x14b   :  { %v258_v61 = vadd.f32 %v1034_v23, %v257_v60 }
 0x14d   :  { %v287_v62 = vmax.f32 %v258_v61, 0.0 }
 0x14f   :  { %v307_v63 = vmul.f32 %v1040_v26, %v287_v62 }
 0x151   :  { %v337_v0 = vsel %vm206_vm1, %v307_v63, 0.0 }
 0x152   :  { %338 = vadd.xlane.f32.xlu1 %v337_v0 }
 0x158   :  { %v260_v1 = vpop.f32.mrf.mxu2 }
 0x159   :  { %v261_v2 = vadd.f32 %v1034_v23, %v260_v1 }
 0x15b   :  { %v288_v3 = vmax.f32 %v261_v2, 0.0 }
 0x15d   :  { %v308_v4 = vmul.f32 %v1040_v26, %v288_v3 }
 0x15f   :  { %v340_v5 = vsel %vm206_vm1, %v308_v4, 0.0 }
 0x160   :  { %v262_v6 = vpop.f32.mrf.mxu2  ;;  %341 = vadd.xlane.f32.xlu2 %v340_v5 }
 0x161   :  { %v263_v7 = vadd.f32 %v1034_v23, %v262_v6 }
 0x163   :  { %v289_v8 = vmax.f32 %v263_v7, 0.0 }
 0x165   :  { %v309_v9 = vmul.f32 %v1040_v26, %v289_v8 }
 0x167   :  { %v343_v10 = vsel %vm206_vm1, %v309_v9, 0.0 }
 0x168   :  { %v265_v11 = vpop.f32.mrf.mxu2  ;;  %344 = vadd.xlane.f32.xlu0 %v343_v10 }
 0x169   :  { %v266_v12 = vadd.f32 %v1034_v23, %v265_v11 }
 0x16b   :  { %v290_v13 = vmax.f32 %v266_v12, 0.0 }
 0x16d   :  { %v310_v14 = vmul.f32 %v1040_v26, %v290_v13 }
 0x16f   :  { %v346_v15 = vsel %vm206_vm1, %v310_v14, 0.0 }
 0x170   :  { %v267_v16 = vpop.f32.mrf.mxu2  ;;  %347 = vadd.xlane.f32.xlu1 %v346_v15 }
 0x171   :  { %v268_v17 = vadd.f32 %v1034_v23, %v267_v16 }
 0x173   :  { %v291_v18 = vmax.f32 %v268_v17, 0.0 }
 0x175   :  { %v311_v19 = vmul.f32 %v1040_v26, %v291_v18 }
 0x177   :  { %v349_v20 = vsel %vm206_vm1, %v311_v19, 0.0 }
 0x178   :  { %v270_v21 = vpop.f32.mrf.mxu2  ;;  %350 = vadd.xlane.f32.xlu2 %v349_v20  ;;  %v702_v20 = vlaneseq }
 0x179   :  { %v271_v22 = vadd.f32 %v1034_v23, %v270_v21 }
 0x17b   :  { %v292_v24 = vmax.f32 %v271_v22, 0.0 }
 0x17d   :  { %v312_v25 = vmul.f32 %v1040_v26, %v292_v24 }
 0x17f   :  { %v352_v27 = vsel %vm206_vm1, %v312_v25, 0.0 }
 0x180   :  { %v272_v28 = vpop.f32.mrf.mxu2  ;;  %353 = vadd.xlane.f32.xlu0 %v352_v27 }
 0x181   :  { %v273_v29 = vadd.f32 %v1034_v23, %v272_v28  ;;  %v1132_v28 = vand.u32 127, %v702_v20 }
 0x183   :  { %v293_v30 = vmax.f32 %v273_v29, 0.0 }
 0x185   :  { %v313_v31 = vmul.f32 %v1040_v26, %v293_v30 }
 0x187   :  { %v355_v32 = vsel %vm206_vm1, %v313_v31, 0.0 }
 0x188   :  { %v275_v33 = vpop.f32.mrf.mxu2  ;;  %356 = vadd.xlane.f32.xlu1 %v355_v32 }
 0x189   :  { %v276_v34 = vadd.f32 %v1034_v23, %v275_v33 }
 0x18b   :  { %v294_v35 = vmax.f32 %v276_v34, 0.0 }
 0x18d   :  { %v314_v36 = vmul.f32 %v1040_v26, %v294_v35  ;;  %v318_v43 = vpop.xlane.xlu0 %317 }
 0x18e   :  { %v366_v47 = vadd.f32 %v1092_v45, %v318_v43 }
 0x18f   :  { %v358_v37 = vsel %vm206_vm1, %v314_v36, 0.0  ;;  %v1142_v36 = vadd.s32 4294967288, %v1132_v28 }
 0x190   :  { %v277_v38 = vpop.f32.mrf.mxu2  ;;  %359 = vadd.xlane.f32.xlu2 %v358_v37  ;;  %v811_v49 = vmul.f32 -1.442695, %v366_v47 }
 0x191   :  { %v278_v39 = vadd.f32 %v1034_v23, %v277_v38 }
 0x192   :  { %842 = vpow2.f32 %v811_v49 }
 0x193   :  { %v295_v40 = vmax.f32 %v278_v39, 0.0  ;;  %v1146_v39 = vadd.s32 4294967280, %v1132_v28 }
 0x195   :  { %v315_v41 = vmul.f32 %v1040_v26, %v295_v40  ;;  %v321_v46 = vpop.xlane.xlu0 %320 }
 0x196   :  { %v367_v48 = vadd.f32 %v1092_v45, %v321_v46 }
 0x197   :  { %v361_v42 = vsel %vm206_vm1, %v315_v41, 0.0 }
 0x198   :  { %362 = vadd.xlane.f32.xlu0 %v361_v42  ;;  %v812_v50 = vmul.f32 -1.442695, %v367_v48  ;;  %v843_v55 = vpop.eup %842 }
 0x199   :  { %v1099_v58 = vadd.f32 1.0, %v843_v55 }
 0x19a   :  { %844 = vpow2.f32 %v812_v50 }
 0x19b   :  { %v455_v33 = vand.u32 2147483647, %v1099_v58  ;;  %v457_v35 = vand.u32 2147483648, %v1099_v58  ;;  %vm451_vm2 = vweird.f32 %v1099_v58 }
 0x19d   :  { %v324_v44 = vpop.xlane.xlu1 %323  ;;  %vm1156_vm4 = vcmp.eq.f32.partialorder %v455_v33, 8.507059e+37  ;;  %v458_v50 = vor.u32 1.1754944e-38, %v457_v35 }
 0x19e   :  { %v368_v26 = vadd.f32 %v1092_v45, %v324_v44 }
 0x1a0   :  { %v813_v53 = vmul.f32 -1.442695, %v368_v26  ;;  %v845_v56 = vpop.eup %844 }
 0x1a1   :  { %v1101_v59 = vadd.f32 1.0, %v845_v56 }
 0x1a2   :  { %846 = vpow2.f32 %v813_v53 }
 0x1a3   :  { %v470_v43 = vand.u32 2147483647, %v1101_v59  ;;  %v472_v49 = vand.u32 2147483648, %v1101_v59  ;;  %vm466_vm7 = vweird.f32 %v1101_v59 }
 0x1a5   :  { %v327_v23 = vpop.xlane.xlu1 %326  ;;  %vm1178_vm8 = vcmp.eq.f32.partialorder %v470_v43, 8.507059e+37 }
 0x1a6   :  { %v369_v51 = vadd.f32 %v1092_v45, %v327_v23 }
 0x1a8   :  { %v814_v54 = vmul.f32 -1.442695, %v369_v51  ;;  %v847_v62 = vpop.eup %846 }
 0x1a9   :  { %v1106_v1 = vadd.f32 1.0, %v847_v62 }
 0x1aa   :  { %848 = vpow2.f32 %v814_v54 }
 0x1ab   :  { %850 = vrcp.f32 %v1099_v58  ;;  %vm481_vm13 = vweird.f32 %v1106_v1 }
 0x1ac   :  { %852 = vrcp.f32 %v1101_v59 }
 0x1ad   :  { %v330_v52 = vpop.xlane.xlu2 %329 }
 0x1ae   :  { %v370_v57 = vadd.f32 %v1092_v45, %v330_v52 }
 0x1b0   :  { %v815_v61 = vmul.f32 -1.442695, %v370_v57  ;;  %v849_v63 = vpop.eup %848 }
 0x1b1   :  { %v1108_v3 = vadd.f32 1.0, %v849_v63  ;;  %v1111_v7 = vpop.eup %850 }
 0x1b2   :  { %854 = vpow2.f32 %v815_v61  ;;  %v1115_v9 = vpop.eup %852  ;;  %v447_v13 = vmul.f32 %v1111_v7, %v1099_v58  ;;  %vm452_vm3 = vweird.f32 %v1111_v7 }
 0x1b3   :  { %856 = vrcp.f32 %v1106_v1  ;;  %v462_v15 = vmul.f32 %v1115_v9, %v1101_v59  ;;  %vm467_vm5 = vweird.f32 %v1115_v9  ;;  %vm1173_vm6 = vmor %vm451_vm2, %vm452_vm3  ;;  %v485_v59 = vand.u32 2147483647, %v1106_v1 }
 0x1b4   :  { %858 = vrcp.f32 %v1108_v3  ;;  %v448_v22 = vsub.f32 1.0, %v447_v13  ;;  %vm1189_vm9 = vmor %vm466_vm7, %vm467_vm5  ;;  %vm496_vm15 = vweird.f32 %v1108_v3  ;;  %vm715_vm3 = vcmask 261312  }
 0x1b5   :  { %v333_v60 = vpop.xlane.xlu2 %332  ;;  %v463_v24 = vsub.f32 1.0, %v462_v15  ;;  %vm1233_vm1 = vcmp.eq.f32.partialorder %v485_v59, 8.507059e+37 }
 0x1b6   :  { %v371_v0 = vadd.f32 %v1092_v45, %v333_v60  ;;  %v449_v32 = vmul.f32 %v1111_v7, %v448_v22  ;;  %v1183_v60 = vadd.s32 4294967272, %v1132_v28 }
 0x1b7   :  { %v464_v37 = vmul.f32 %v1115_v9, %v463_v24 }
 0x1b8   :  { %v816_v5 = vmul.f32 -1.442695, %v371_v0  ;;  %v855_v10 = vpop.eup %854  ;;  %v450_v47 = vadd.f32 %v1111_v7, %v449_v32  ;;  %v473_v0 = vor.u32 1.1754944e-38, %v472_v49 }
 0x1b9   :  { %v1122_v16 = vadd.f32 1.0, %v855_v10  ;;  %v1124_v17 = vpop.eup %856  ;;  %v465_v26 = vadd.f32 %v1115_v9, %v464_v37 }
 0x1ba   :  { %860 = vpow2.f32 %v816_v5  ;;  %v1127_v19 = vpop.eup %858  ;;  %v477_v25 = vmul.f32 %v1124_v17, %v1106_v1  ;;  %v454_v58 = vsel %vm1173_vm6, %v1111_v7, %v450_v47  ;;  %vm482_vm11 = vweird.f32 %v1124_v17 }
 0x1bb   :  { %v492_v29 = vmul.f32 %v1127_v19, %v1108_v3  ;;  %v469_v5 = vsel %vm1189_vm9, %v1115_v9, %v465_v26  ;;  %vm497_vm12 = vweird.f32 %v1127_v19  ;;  %v502_v9 = vand.u32 2147483648, %v1108_v3  ;;  %vm1222_vm14 = vmor %vm481_vm13, %vm482_vm11 }
 0x1bc   :  { %v478_v40 = vsub.f32 1.0, %v477_v25  ;;  %v474_v20 = vsel %vm1178_vm8, %v473_v0, %v469_v5  ;;  %vm1239_vm2 = vmor %vm496_vm15, %vm497_vm12  ;;  %vm511_vm6 = vweird.f32 %v1122_v16  ;;  %v517_v57 = vand.u32 2147483648, %v1122_v16 }
 0x1bd   :  { %v336_v2 = vpop.xlane.xlu0 %335  ;;  %v493_v44 = vsub.f32 1.0, %v492_v29  ;;  %v706_v35 = vperm.slane %v474_v20, %v1142_v36  ;;  %v503_v37 = vor.u32 1.1754944e-38, %v502_v9 }
 0x1be   :  { %v372_v6 = vadd.f32 %v1092_v45, %v336_v2  ;;  %v479_v52 = vmul.f32 %v1124_v17, %v478_v40 }
 0x1bf   :  { %v494_v61 = vmul.f32 %v1127_v19, %v493_v44  ;;  %v515_v44 = vand.u32 2147483647, %v1122_v16 }
 0x1c0   :  { %v817_v11 = vmul.f32 -1.442695, %v372_v6  ;;  %v861_v21 = vpop.eup %860  ;;  %v487_v6 = vand.u32 2147483648, %v1106_v1  ;;  %v480_v7 = vadd.f32 %v1124_v17, %v479_v52  ;;  %v500_v1 = vand.u32 2147483647, %v1108_v3 }
 0x1c1   :  { %v1136_v30 = vadd.f32 1.0, %v861_v21  ;;  %v1267_v52 = vadd.s32 4294967256, %v1132_v28  ;;  %vm1285_vm8 = vcmp.eq.f32.partialorder %v515_v44, 8.507059e+37 }
 0x1c2   :  { %862 = vpow2.f32 %v817_v11  ;;  %v495_v11 = vadd.f32 %v1127_v19, %v494_v61  ;;  %v484_v24 = vsel %vm1222_vm14, %v1124_v17, %v480_v7  ;;  %v1279_v61 = vadd.s32 4294967248, %v1132_v28 }
 0x1c3   :  { %vm526_vm11 = vweird.f32 %v1136_v30  ;;  %vm723_vm14 = vcmask 392512  }
 0x1c4   :  { %v499_v17 = vsel %vm1239_vm2, %v1127_v19, %v495_v11  ;;  %v1301_v11 = vadd.s32 4294967240, %v1132_v28 }
 0x1c5   :  { %v339_v4 = vpop.xlane.xlu1 %338 }
 0x1c6   :  { %v373_v8 = vadd.f32 %v1092_v45, %v339_v4 }
 0x1c8   :  { %v818_v14 = vmul.f32 -1.442695, %v373_v8  ;;  %v863_v34 = vpop.eup %862 }
 0x1c9   :  { %v1161_v23 = vadd.f32 1.0, %v863_v34 }
 0x1ca   :  { %864 = vpow2.f32 %v818_v14  ;;  %v1212_v14 = vadd.s32 4294967264, %v1132_v28 }
 0x1cb   :  { %866 = vrcp.f32 %v1122_v16  ;;  %vm541_vm15 = vweird.f32 %v1161_v23 }
 0x1d0   :  { %v865_v38 = vpop.eup %864 }
 0x1d1   :  { %v1149_v42 = vpop.eup %866  ;;  %v1165_v51 = vadd.f32 1.0, %v865_v38 }
 0x1d2   :  { %v507_v53 = vmul.f32 %v1149_v42, %v1122_v16  ;;  %vm512_vm5 = vweird.f32 %v1149_v42 }
 0x1d3   :  { %v342_v12 = vpop.xlane.xlu2 %341  ;;  %vm1273_vm7 = vmor %vm511_vm6, %vm512_vm5  ;;  %vm727_vm5 = vcmask 458112  }
 0x1d4   :  { %v374_v18 = vadd.f32 %v1092_v45, %v342_v12  ;;  %v508_v8 = vsub.f32 1.0, %v507_v53 }
 0x1d6   :  { %v819_v27 = vmul.f32 -1.442695, %v374_v18  ;;  %v459_v18 = vsel %vm1156_vm4, %v458_v50, %v454_v58  ;;  %v509_v29 = vmul.f32 %v1149_v42, %v508_v8  ;;  %vm501_vm4 = vcmp.eq.f32.partialorder %v500_v1, 8.507059e+37 }
 0x1d7   :  { %v504_v19 = vsel %vm501_vm4, %v503_v37, %v499_v17  ;;  %v518_v8 = vor.u32 1.1754944e-38, %v517_v57  ;;  %v545_v17 = vand.u32 2147483647, %v1161_v23  ;;  %vm556_vm4 = vweird.f32 %v1165_v51 }
 0x1d8   :  { %868 = vpow2.f32 %v819_v27 }
 0x1d9   :  { %870 = vrcp.f32 %v1136_v30 }
 0x1da   :  { %872 = vrcp.f32 %v1161_v23 }
 0x1db   :  { %v345_v31 = vpop.xlane.xlu0 %344  ;;  %874 = vrcp.f32 %v1165_v51 }
 0x1dc   :  { %v375_v41 = vadd.f32 %v1092_v45, %v345_v31  ;;  %v488_v31 = vor.u32 1.1754944e-38, %v487_v6 }
 0x1de   :  { %v820_v54 = vmul.f32 -1.442695, %v375_v41  ;;  %v869_v62 = vpop.eup %868  ;;  %v704_v41 = vperm.slane %v459_v18, %v1132_v28  ;;  %v489_v43 = vsel %vm1233_vm1, %v488_v31, %v484_v24 }
 0x1df   :  { %v1195_v4 = vpop.eup %870  ;;  %v1206_v12 = vadd.f32 1.0, %v869_v62  ;;  %v714_v62 = vperm.slane %v504_v19, %v1183_v60 }
 0x1e0   :  { %876 = vpow2.f32 %v820_v54  ;;  %v522_v15 = vmul.f32 %v1195_v4, %v1136_v30  ;;  %v1228_v22 = vpop.eup %872  ;;  %v708_v26 = vsel %vm707_vm10, %v706_v35, %v704_v41  ;;  %vm527_vm9 = vweird.f32 %v1195_v4 }
 0x1e1   :  { %v1244_v3 = vpop.eup %874  ;;  %v537_v36 = vmul.f32 %v1228_v22, %v1161_v23  ;;  %vm719_vm10 = vcmask 326912   ;;  %vm1313_vm13 = vmor %vm526_vm11, %vm527_vm9  ;;  %vm571_vm11 = vweird.f32 %v1206_v12 }
 0x1e2   :  { %v523_v38 = vsub.f32 1.0, %v522_v15  ;;  %v552_v48 = vmul.f32 %v1244_v3, %v1165_v51  ;;  %vm557_vm1 = vweird.f32 %v1244_v3 }
 0x1e3   :  { %v348_v46 = vpop.xlane.xlu1 %347  ;;  %v538_v0 = vsub.f32 1.0, %v537_v36  ;;  %vm1362_vm6 = vmor %vm556_vm4, %vm557_vm1 }
 0x1e4   :  { %v376_v55 = vadd.f32 %v1092_v45, %v348_v46  ;;  %v510_v46 = vadd.f32 %v1149_v42, %v509_v29  ;;  %v524_v53 = vmul.f32 %v1195_v4, %v523_v38  ;;  %v553_v59 = vsub.f32 1.0, %v552_v48 }
 0x1e5   :  { %v539_v1 = vmul.f32 %v1228_v22, %v538_v0  ;;  %v575_v0 = vand.u32 2147483647, %v1206_v12 }
 0x1e6   :  { %v821_v10 = vmul.f32 -1.442695, %v376_v55  ;;  %v877_v34 = vpop.eup %876  ;;  %v710_v55 = vperm.slane %v489_v43, %v1146_v39  ;;  %v514_v58 = vsel %vm1273_vm7, %v1149_v42, %v510_v46  ;;  %v530_v39 = vand.u32 2147483647, %v1136_v30 }
 0x1e7   :  { %v1262_v49 = vadd.f32 1.0, %v877_v34  ;;  %v525_v5 = vadd.f32 %v1195_v4, %v524_v53  ;;  %v519_v20 = vsel %vm1285_vm8, %v518_v8, %v514_v58  ;;  %v554_v24 = vmul.f32 %v1244_v3, %v553_v59 }
 0x1e8   :  { %878 = vpow2.f32 %v821_v10  ;;  %v712_v7 = vsel %vm711_vm0, %v710_v55, %v708_v26  ;;  %v532_v10 = vand.u32 2147483648, %v1136_v30  ;;  %vm1305_vm12 = vcmp.eq.f32.partialorder %v530_v39, 8.507059e+37 }
 0x1e9   :  { %880 = vrcp.f32 %v1206_v12  ;;  %v529_v30 = vsel %vm1313_vm13, %v1195_v4, %v525_v5  ;;  %v718_v34 = vperm.slane %v519_v20, %v1212_v14  ;;  %vm542_vm0 = vweird.f32 %v1228_v22 }
 0x1ea   :  { %v533_v31 = vor.u32 1.1754944e-38, %v532_v10  ;;  %v540_v37 = vadd.f32 %v1228_v22, %v539_v1  ;;  %v555_v38 = vadd.f32 %v1244_v3, %v554_v24  ;;  %vm1349_vm2 = vmor %vm541_vm15, %vm542_vm0  ;;  %v560_v26 = vand.u32 2147483647, %v1165_v51 }
 0x1eb   :  { %v351_v2 = vpop.xlane.xlu2 %350  ;;  %vm731_vm8 = vcmask 523712   ;;  %vm576_vm13 = vcmp.eq.f32.partialorder %v575_v0, 8.507059e+37  ;;  %vm586_vm15 = vweird.f32 %v1262_v49 }
 0x1ec   :  { %v377_v13 = vadd.f32 %v1092_v45, %v351_v2  ;;  %v534_v35 = vsel %vm1305_vm12, %v533_v31, %v529_v30  ;;  %v544_v55 = vsel %vm1349_vm2, %v1228_v22, %v540_v37  ;;  %v577_v22 = vand.u32 2147483648, %v1206_v12 }
 0x1ed   :  { %v722_v48 = vperm.slane %v534_v35, %v1267_v52  ;;  %v559_v52 = vsel %vm1362_vm6, %v1244_v3, %v555_v38  ;;  %vm561_vm9 = vcmp.eq.f32.partialorder %v560_v26, 8.507059e+37  ;;  %vm735_vm12 = vcmask 589312  }
 0x1ee   :  { %v822_v32 = vmul.f32 -1.442695, %v377_v13  ;;  %v879_v50 = vpop.eup %878  ;;  %v716_v13 = vsel %vm715_vm3, %v714_v62, %v712_v7  ;;  %vm1353_vm3 = vcmp.eq.f32.partialorder %v545_v17, 8.507059e+37  ;;  %v578_v9 = vor.u32 1.1754944e-38, %v577_v22 }
 0x1ef   :  { %v1270_v54 = vpop.eup %880  ;;  %v1291_v16 = vadd.f32 1.0, %v879_v50  ;;  %v720_v58 = vsel %vm719_vm10, %v718_v34, %v716_v13  ;;  %v1432_v38 = vadd.s32 4294967208, %v1132_v28 }
 0x1f0   :  { %882 = vpow2.f32 %v822_v32  ;;  %v567_v42 = vmul.f32 %v1270_v54, %v1206_v12  ;;  %v547_v32 = vand.u32 2147483648, %v1161_v23  ;;  %vm572_vm7 = vweird.f32 %v1270_v54 }
 0x1f1   :  { %v724_v59 = vsel %vm723_vm14, %v722_v48, %v720_v58  ;;  %vm1392_vm10 = vmor %vm571_vm11, %vm572_vm7  ;;  %v605_v37 = vand.u32 2147483647, %v1291_v16 }
 0x1f2   :  { %v568_v25 = vsub.f32 1.0, %v567_v42  ;;  %v548_v46 = vor.u32 1.1754944e-38, %v547_v32  ;;  %v1397_v42 = vadd.s32 4294967224, %v1132_v28  ;;  %v592_v32 = vand.u32 2147483648, %v1262_v49 }
 0x1f3   :  { %v354_v33 = vpop.xlane.xlu0 %353  ;;  %vm1459_vm4 = vcmp.eq.f32.partialorder %v605_v37, 8.507059e+37 }
 0x1f4   :  { %v378_v40 = vadd.f32 %v1092_v45, %v354_v33  ;;  %v1330_v33 = vadd.s32 4294967232, %v1132_v28  ;;  %v569_v41 = vmul.f32 %v1270_v54, %v568_v25  ;;  %v549_v39 = vsel %vm1353_vm3, %v548_v46, %v544_v55 }
 0x1f5   :  { %v726_v13 = vperm.slane %v549_v39, %v1279_v61  ;;  %v593_v46 = vor.u32 1.1754944e-38, %v592_v32  ;;  %vm601_vm3 = vweird.f32 %v1291_v16 }
 0x1f6   :  { %v823_v47 = vmul.f32 -1.442695, %v378_v40  ;;  %v883_v6 = vpop.eup %882  ;;  %v570_v57 = vadd.f32 %v1270_v54, %v569_v41 }
 0x1f7   :  { %v1323_v27 = vadd.f32 1.0, %v883_v6  ;;  %v728_v17 = vsel %vm727_vm5, %v726_v13, %v724_v59 }
 0x1f8   :  { %884 = vpow2.f32 %v823_v47  ;;  %v562_v47 = vand.u32 2147483648, %v1165_v51  ;;  %v574_v12 = vsel %vm1392_vm10, %v1270_v54, %v570_v57  ;;  %v590_v54 = vand.u32 2147483647, %v1262_v49 }
 0x1f9   :  { %886 = vrcp.f32 %v1262_v49  ;;  %v579_v30 = vsel %vm576_vm13, %v578_v9, %v574_v12  ;;  %vm616_vm6 = vweird.f32 %v1323_v27  ;;  %vm743_vm10 = vcmask 720512  }
 0x1fa   :  { %888 = vrcp.f32 %v1291_v16  ;;  %v563_v63 = vor.u32 1.1754944e-38, %v562_v47  ;;  %v734_v35 = vperm.slane %v579_v30, %v1330_v33  ;;  %vm1441_vm1 = vcmp.eq.f32.partialorder %v590_v54, 8.507059e+37 }
 0x1fb   :  { %v357_v2 = vpop.xlane.xlu1 %356  ;;  %v607_v33 = vand.u32 2147483648, %v1291_v16  ;;  %v757_v30 = vadd.s32 4294967184, %v1132_v28 }
 0x1fc   :  { %v379_v60 = vadd.f32 %v1092_v45, %v357_v2  ;;  %v564_v2 = vsel %vm561_vm9, %v563_v63, %v559_v52  ;;  %v1482_v63 = vadd.s32 4294967192, %v1132_v28 }
 0x1fd   :  { %v730_v21 = vperm.slane %v564_v2, %v1301_v11  ;;  %v608_v57 = vor.u32 1.1754944e-38, %v607_v33 }
 0x1fe   :  { %v824_v15 = vmul.f32 -1.442695, %v379_v60  ;;  %v885_v18 = vpop.eup %884 }
 0x1ff   :  { %v1325_v29 = vpop.eup %886  ;;  %v1335_v4 = vadd.f32 1.0, %v885_v18 }
 0x200   :  { %890 = vpow2.f32 %v824_v15  ;;  %v582_v14 = vmul.f32 %v1325_v29, %v1262_v49  ;;  %v1347_v43 = vpop.eup %888  ;;  %v1408_v15 = vadd.s32 4294967216, %v1132_v28  ;;  %vm587_vm14 = vweird.f32 %v1325_v29 }
 0x201   :  { %892 = vrcp.f32 %v1323_v27  ;;  %v597_v51 = vmul.f32 %v1347_v43, %v1291_v16  ;;  %vm1437_vm0 = vmor %vm586_vm15, %vm587_vm14  ;;  %vm602_vm2 = vweird.f32 %v1347_v43  ;;  %vm631_vm11 = vweird.f32 %v1335_v4 }
 0x202   :  { %894 = vrcp.f32 %v1335_v4  ;;  %v583_v62 = vsub.f32 1.0, %v582_v14  ;;  %vm1471_vm5 = vmor %vm601_vm3, %vm602_vm2  ;;  %v635_v13 = vand.u32 2147483647, %v1335_v4 }
 0x203   :  { %v360_v40 = vpop.xlane.xlu2 %359  ;;  %v598_v8 = vsub.f32 1.0, %v597_v51 }
 0x204   :  { %v380_v23 = vadd.f32 %v1092_v45, %v360_v40  ;;  %v584_v7 = vmul.f32 %v1325_v29, %v583_v62  ;;  %v732_v40 = vsel %vm731_vm8, %v730_v21, %v728_v17  ;;  %vm739_vm8 = vcmask 654912  }
 0x205   :  { %v599_v31 = vmul.f32 %v1347_v43, %v598_v8  ;;  %v1457_v50 = vsel %vm735_vm12, %v734_v35, %v732_v40 }
 0x206   :  { %v891_v36 = vpop.eup %890  ;;  %v825_v53 = vmul.f32 -1.442695, %v380_v23  ;;  %v585_v25 = vadd.f32 %v1325_v29, %v584_v7 }
 0x207   :  { %v1375_v56 = vadd.f32 1.0, %v891_v36  ;;  %v1383_v3 = vpop.eup %892  ;;  %v600_v44 = vadd.f32 %v1347_v43, %v599_v31  ;;  %v1454_v36 = vadd.s32 4294967200, %v1132_v28 }
 0x208   :  { %896 = vpow2.f32 %v825_v53  ;;  %v1399_v6 = vpop.eup %894  ;;  %v612_v18 = vmul.f32 %v1383_v3, %v1323_v27  ;;  %v589_v23 = vsel %vm1437_vm0, %v1325_v29, %v585_v25  ;;  %v620_v29 = vand.u32 2147483647, %v1323_v27 }
 0x209   :  { %898 = vrcp.f32 %v1375_v56  ;;  %v622_v53 = vand.u32 2147483648, %v1323_v27  ;;  %v1469_v16 = vsel %vm1441_vm1, %v593_v46, %v589_v23  ;;  %v604_v58 = vsel %vm1471_vm5, %v1347_v43, %v600_v44 }
 0x20a   :  { %v613_v34 = vsub.f32 1.0, %v612_v18  ;;  %vm617_vm7 = vweird.f32 %v1383_v3  ;;  %v738_v43 = vperm.slane %v1469_v16, %v1397_v42  ;;  %vm1493_vm9 = vcmp.eq.f32.partialorder %v620_v29, 8.507059e+37 }
 0x20b   :  { %v363_v60 = vpop.xlane.xlu0 %362  ;;  %v623_v2 = vor.u32 1.1754944e-38, %v622_v53  ;;  %vm632_vm12 = vweird.f32 %v1399_v6  ;;  %vm1502_vm13 = vmor %vm616_vm6, %vm617_vm7  ;;  %v637_v42 = vand.u32 2147483648, %v1335_v4  ;;  %v652_v9 = vand.u32 2147483648, %v1375_v56 }
 0x20c   :  { %v381_v10 = vadd.f32 %v1092_v45, %v363_v60  ;;  %v627_v45 = vmul.f32 %v1399_v6, %v1335_v4  ;;  %v614_v47 = vmul.f32 %v1383_v3, %v613_v34  ;;  %v609_v60 = vsel %vm1459_vm4, %v608_v57, %v604_v58  ;;  %vm1516_vm0 = vmor %vm631_vm11, %vm632_vm12 }
 0x20d   :  { %vm646_vm1 = vweird.f32 %v1375_v56  ;;  %v638_v25 = vor.u32 1.1754944e-38, %v637_v42  ;;  %vm636_vm5 = vcmp.eq.f32.partialorder %v635_v13, 8.507059e+37  ;;  %v653_v17 = vor.u32 1.1754944e-38, %v652_v9 }
 0x20e   :  { %v897_v20 = vpop.eup %896  ;;  %v826_v1 = vmul.f32 -1.442695, %v381_v10  ;;  %v628_v49 = vsub.f32 1.0, %v627_v45  ;;  %v615_v0 = vadd.f32 %v1383_v3, %v614_v47  ;;  %vm747_vm11 = vcmask 786112  }
 0x20f   :  { %v1414_v24 = vpop.eup %898  ;;  %v1419_v61 = vadd.f32 1.0, %v897_v20  ;;  %v650_v20 = vand.u32 2147483647, %v1375_v56  ;;  %vm751_vm12 = vcmask 851712  }
 0x210   :  { %v642_v11 = vmul.f32 %v1414_v24, %v1375_v56  ;;  %900 = vpow2.f32 %v826_v1  ;;  %v629_v62 = vmul.f32 %v1399_v6, %v628_v49  ;;  %vm647_vm14 = vweird.f32 %v1414_v24 }
 0x211   :  { %902 = vrcp.f32 %v1419_v61  ;;  %v619_v10 = vsel %vm1502_vm13, %v1383_v3, %v615_v0  ;;  %v667_v54 = vand.u32 2147483648, %v1419_v61  ;;  %vm1527_vm2 = vmor %vm646_vm1, %vm647_vm14  ;;  %vm661_vm3 = vweird.f32 %v1419_v61 }
 0x212   :  { %v643_v19 = vsub.f32 1.0, %v642_v11  ;;  %v630_v12 = vadd.f32 %v1399_v6, %v629_v62  ;;  %v665_v45 = vand.u32 2147483647, %v1419_v61  ;;  %v624_v56 = vsel %vm1493_vm9, %v623_v2, %v619_v10 }
 0x213   :  { %v742_v11 = vperm.slane %v609_v60, %v1408_v15  ;;  %vm651_vm6 = vcmp.eq.f32.partialorder %v650_v20, 8.507059e+37  ;;  %v668_v34 = vor.u32 1.1754944e-38, %v667_v54  ;;  %v746_v37 = vperm.slane %v624_v56, %v1432_v38 }
 0x214   :  { %v644_v22 = vmul.f32 %v1414_v24, %v643_v19  ;;  %v634_v4 = vsel %vm1516_vm0, %v1399_v6, %v630_v12  ;;  %vm666_vm7 = vcmp.eq.f32.partialorder %v665_v45, 8.507059e+37  ;;  %v740_v15 = vsel %vm739_vm8, %v738_v43, %v1457_v50 }
 0x215   :  { %v761_v38 = vadd.s32 4294967176, %v1132_v28  ;;  %v744_v19 = vsel %vm743_vm10, %v742_v11, %v740_v15  ;;  %vm755_vm14 = vcmask 917312   ;;  %vm759_vm0 = vcmask 982912  }
 0x216   :  { %v901_v48 = vpop.eup %900  ;;  %v645_v7 = vadd.f32 %v1414_v24, %v644_v22  ;;  %vm763_vm1 = vcmask 1048512  }
 0x217   :  { %v1465_v55 = vpop.eup %902  ;;  %v1476_v51 = vadd.f32 1.0, %v901_v48  ;;  %v748_v48 = vsel %vm747_vm11, %v746_v37, %v744_v19 }
 0x218   :  { %v657_v39 = vmul.f32 %v1465_v55, %v1419_v61  ;;  %vm662_vm15 = vweird.f32 %v1465_v55  ;;  %v649_v31 = vsel %vm1527_vm2, %v1414_v24, %v645_v7  ;;  %v639_v61 = vsel %vm636_vm5, %v638_v25, %v634_v4 }
 0x219   :  { %904 = vrcp.f32 %v1476_v51  ;;  %vm663_vm4 = vmor %vm661_vm3, %vm662_vm15  ;;  %v654_v40 = vsel %vm651_vm6, %v653_v17, %v649_v31  ;;  %v682_v24 = vand.u32 2147483648, %v1476_v51  ;;  %v680_v33 = vand.u32 2147483647, %v1476_v51 }
 0x21a   :  { %v658_v5 = vsub.f32 1.0, %v657_v39  ;;  %v750_v49 = vperm.slane %v639_v61, %v1454_v36  ;;  %v754_v23 = vperm.slane %v654_v40, %v1482_v63  ;;  %vm676_vm13 = vweird.f32 %v1476_v51 }
 0x21b   :  { %v683_v47 = vor.u32 1.1754944e-38, %v682_v24  ;;  %vm681_vm8 = vcmp.eq.f32.partialorder %v680_v33, 8.507059e+37 }
 0x21c   :  { %v659_v8 = vmul.f32 %v1465_v55, %v658_v5  ;;  %v752_v26 = vsel %vm751_vm12, %v750_v49, %v748_v48 }
 0x21d   :  { %v756_v29 = vsel %vm755_vm14, %v754_v23, %v752_v26 }
 0x21e   :  { %v660_v21 = vadd.f32 %v1465_v55, %v659_v8 }
 0x21f   :  { %v905_v1 = vpop.eup %904 }
 0x220   :  { %v672_v6 = vmul.f32 %v905_v1, %v1476_v51  ;;  %v664_v32 = vsel %vm663_vm4, %v1465_v55, %v660_v21  ;;  %vm677_vm9 = vweird.f32 %v905_v1 }
 0x221   :  { %v669_v41 = vsel %vm666_vm7, %v668_v34, %v664_v32  ;;  %vm678_vm15 = vmor %vm676_vm13, %vm677_vm9 }
 0x222   :  { %v673_v35 = vsub.f32 1.0, %v672_v6  ;;  %v758_v46 = vperm.slane %v669_v41, %v757_v30 }
 0x224   :  { %v674_v14 = vmul.f32 %v905_v1, %v673_v35  ;;  %v760_v55 = vsel %vm759_vm0, %v758_v46, %v756_v29 }
 0x226   :  { %v675_v44 = vadd.f32 %v905_v1, %v674_v14 }
 0x228   :  { %v679_v50 = vsel %vm678_vm15, %v905_v1, %v675_v44 }
 0x229   :  { %v684_v36 = vsel %vm681_vm8, %v683_v47, %v679_v50 }
 0x22a   :  { %v762_v53 = vperm.slane %v684_v36, %v761_v38 }
 0x22c   :  { %v764_v28 = vsel %vm763_vm1, %v762_v53, %v760_v55 }
 0x22d   :  { %766 = vst [vmem:[%s1564_s7] sm:$0x1] %v764_v28 }

</bundles_post_ra>
